<compile_context>
chip_gen: v6e
topology: v6e:2x2x1
jax: 0.10.0
libtpu: 0.0.40
codegen_flags: <defaults>
</compile_context>

<pallas_src>
import numpy as np
import jax
import jax.numpy as jnp
from jax.experimental import pallas as pl
from jax.experimental.pallas import tpu as pltpu

# cv2.COLOR_BGR2GRAY weights for input channels 0 (B), 1 (G), 2 (R); _GRAY05
# folds in the overall 0.5 Haar analysis scale (1/sqrt(2) per separable stage).
_BGR2GRAY = (0.114, 0.587, 0.299)
_GRAY05 = tuple(0.5 * w for w in _BGR2GRAY)


def _pick_tile_h(H, max_tile=512):
    """Largest divisor of H that is a multiple of 16 and <= max_tile.

    Multiple of 16 keeps the output row block (TILE_H/2) sublane aligned and
    the Haar row pairs tile-local.  Falls back to the full H (single row tile)
    when no such divisor exists -- still correct, just a bigger block.
    """
    best = H
    t = 16
    while t <= min(H, max_tile):
        if H % t == 0:
            best = t
        t += 16
    return best


def _haar_matrices(tile_h, W):
    """+-1 Haar analysis matrices (exact in bf16).

    r_lo/r_hi: (TILE_H/2, TILE_H) row-pair sum / difference (left factor).
    c_lo/c_hi: (W, W/2)           col-pair sum / difference (right factor).
    With gray pre-scaled by 0.5 (pywt 'haar' sign convention):
        cA = r_lo @ gray05 @ c_lo      cH = r_hi @ gray05 @ c_lo
        cV = r_lo @ gray05 @ c_hi      cD = r_hi @ gray05 @ c_hi
    """
    th2, w2 = tile_h // 2, W // 2
    r_lo = np.zeros((th2, tile_h), np.float32)
    r_hi = np.zeros((th2, tile_h), np.float32)
    i = np.arange(th2)
    r_lo[i, 2 * i] = 1.0
    r_lo[i, 2 * i + 1] = 1.0
    r_hi[i, 2 * i] = 1.0
    r_hi[i, 2 * i + 1] = -1.0
    c_lo = np.zeros((W, w2), np.float32)
    c_hi = np.zeros((W, w2), np.float32)
    j = np.arange(w2)
    c_lo[2 * j, j] = 1.0
    c_lo[2 * j + 1, j] = 1.0
    c_hi[2 * j, j] = 1.0
    c_hi[2 * j + 1, j] = -1.0
    bf = jnp.bfloat16
    return (jnp.asarray(r_lo, bf), jnp.asarray(r_hi, bf),
            jnp.asarray(c_lo, bf), jnp.asarray(c_hi, bf))


def _hwt_kernel(x_ref, rlo_ref, rhi_ref, clo_ref, chi_ref, o_ref):
    """x_ref: (1,3,TILE_H,W)  r*: (TILE_H/2,TILE_H)  c*: (W,W/2)
    o_ref: (1,4,TILE_H/2,W/2)."""
    # Grayscale with the 0.5 Haar scale folded in; accumulated per channel on
    # the VPU so no (3, TILE_H, W) f32 temporary is ever materialized.
    gray = _GRAY05[0] * x_ref[0, 0].astype(jnp.float32)
    gray = gray + _GRAY05[1] * x_ref[0, 1].astype(jnp.float32)
    gray = gray + _GRAY05[2] * x_ref[0, 2].astype(jnp.float32)
    g = gray.astype(jnp.bfloat16)

    # Row analysis on the MXU (bf16 operands, f32 accumulation).
    t_lo = jnp.dot(rlo_ref[...], g, preferred_element_type=jnp.float32)
    t_hi = jnp.dot(rhi_ref[...], g, preferred_element_type=jnp.float32)
    t_lo = t_lo.astype(jnp.bfloat16)
    t_hi = t_hi.astype(jnp.bfloat16)

    # Column analysis: each subband is a direct, lane-aligned matmul output.
    o_ref[0, 0] = jnp.dot(t_lo, clo_ref[...],
                          preferred_element_type=jnp.float32).astype(o_ref.dtype)  # cA
    o_ref[0, 1] = jnp.dot(t_hi, clo_ref[...],
                          preferred_element_type=jnp.float32).astype(o_ref.dtype)  # cH
    o_ref[0, 2] = jnp.dot(t_lo, chi_ref[...],
                          preferred_element_type=jnp.float32).astype(o_ref.dtype)  # cV
    o_ref[0, 3] = jnp.dot(t_hi, chi_ref[...],
                          preferred_element_type=jnp.float32).astype(o_ref.dtype)  # cD


def hwt_forward(x_nchw, *, max_tile_h=512):
    """HWT forward. Input (B, 3, H, W) NCHW -> output (B, 4, H/2, W/2)."""
    B, C, H, W = x_nchw.shape
    assert C == 3 and H % 2 == 0 and W % 2 == 0, "HWT expects 3 channels, even H/W"
    tile_h = _pick_tile_h(H, max_tile_h)
    th2, w2, h2 = tile_h // 2, W // 2, H // 2
    n_row_tiles = H // tile_h
    r_lo, r_hi, c_lo, c_hi = _haar_matrices(tile_h, W)

    # Per-step VMEM footprint is O(TILE_H * W): ~11 MB at 640x640 f32
    # (2x double-buffered input block + bf16 matrices + intermediates + output
    # block), comfortably inside the 32 MiB default scoped limit and v7x's
    # 64 MiB total, so no vmem_limit_bytes override is needed.
    itemsize = np.dtype(x_nchw.dtype).itemsize
    cost = pl.CostEstimate(
        # row pass: 2 matmuls (TILE_H/2 x TILE_H x W) per tile,
        # col pass: 4 matmuls (TILE_H/2 x W x W/2)    per tile.
        flops=B * (2 * H * tile_h * W + 2 * H * W * W),
        transcendentals=0,
        bytes_accessed=B * (3 * H * W + 4 * h2 * w2) * itemsize)

    return pl.pallas_call(
        _hwt_kernel,
        out_shape=jax.ShapeDtypeStruct((B, 4, h2, w2), x_nchw.dtype),
        grid=(B, n_row_tiles),
        in_specs=[
            pl.BlockSpec((1, 3, tile_h, W), lambda b, i: (b, 0, i, 0)),
            # Analysis matrices: constant block index across the whole grid ->
            # fetched once and kept resident (no re-DMA per step).
            pl.BlockSpec((th2, tile_h), lambda b, i: (0, 0)),
            pl.BlockSpec((th2, tile_h), lambda b, i: (0, 0)),
            pl.BlockSpec((W, w2), lambda b, i: (0, 0)),
            pl.BlockSpec((W, w2), lambda b, i: (0, 0)),
        ],
        out_specs=pl.BlockSpec((1, 4, th2, w2), lambda b, i: (b, 0, i, 0)),
        compiler_params=pltpu.CompilerParams(
            dimension_semantics=("parallel", "parallel")),
        cost_estimate=cost,
    )(x_nchw, r_lo, r_hi, c_lo, c_hi)
    # TODO(synk): for W/2 not a multiple of 128, a lane-dense output layout
    # (B, H/2, 4*(W/2)) + wrapper reshape would make the subband stores fully
    # unmasked; kept native NCHW here to avoid an extra HBM pass on the output.


def hwt_reference(x_nchw):
    """Pure-JAX f32 reference: cv2 BGR2GRAY weights + pywt dwt2('haar') math."""
    x = x_nchw.astype(jnp.float32)
    gray = (_BGR2GRAY[0] * x[:, 0] + _BGR2GRAY[1] * x[:, 1]
            + _BGR2GRAY[2] * x[:, 2])
    a = gray[:, 0::2, 0::2]
    b = gray[:, 0::2, 1::2]
    c = gray[:, 1::2, 0::2]
    d = gray[:, 1::2, 1::2]
    cA = 0.5 * (a + b + c + d)
    cH = 0.5 * (a + b - c - d)
    cV = 0.5 * (a - b + c - d)
    cD = 0.5 * (a - b - c + d)
    return jnp.stack([cA, cH, cV, cD], axis=1).astype(x_nchw.dtype)


if __name__ == "__main__":
    # HWT asserts c1 == 3 (BGR input) and c2 == 4 (subband output).
    key = jax.random.PRNGKey(0)
    k1, k2 = jax.random.split(key)

    # Small shape consistent with the module (single row tile).
    x = jax.random.normal(k1, (2, 3, 16, 16), jnp.float32)
    out = jax.block_until_ready(hwt_forward(x))
    assert out.shape == (2, 4, 8, 8), out.shape
    ref = jax.block_until_ready(hwt_reference(x))
    # bf16 MXU operands carry ~2^-8 relative error vs the f32 reference.
    np.testing.assert_allclose(np.asarray(out), np.asarray(ref),
                               rtol=2e-2, atol=2e-2)

    # Exercise the multi-row-tile path (forces TILE_H=16 -> 4 row tiles).
    x2 = jax.random.normal(k2, (1, 3, 64, 64), jnp.float32)
    out2 = jax.block_until_ready(hwt_forward(x2, max_tile_h=16))
    ref2 = jax.block_until_ready(hwt_reference(x2))
    np.testing.assert_allclose(np.asarray(out2), np.asarray(ref2),
                               rtol=2e-2, atol=2e-2)

    print("KERNEL_OK")
</pallas_src>

<mosaic_0001>
module attributes {stable_mosaic.version = 11 : i64} {
  func.func @_hwt_kernel(%arg0: i32, %arg1: i32, %arg2: memref<1x3x16x16xf32, #tpu.memory_space<vmem>>, %arg3: memref<8x16xbf16, #tpu.memory_space<vmem>>, %arg4: memref<8x16xbf16, #tpu.memory_space<vmem>>, %arg5: memref<16x8xbf16, #tpu.memory_space<vmem>>, %arg6: memref<16x8xbf16, #tpu.memory_space<vmem>>, %arg7: memref<1x4x8x8xf32, #tpu.memory_space<vmem>>) attributes {dimension_semantics = [#tpu.dimension_semantics<parallel>, #tpu.dimension_semantics<parallel>], iteration_bounds = array<i64: 2, 1>, scalar_prefetch = 0 : i64, scratch_operands = 0 : i64, tpu.core_type = #tpu.core_type<tc>, window_params = [{transform_indices = @transform_0, window_bounds = array<i64: 1, 3, 16, 16>}, {pipeline_mode = #tpu.pipeline_mode<synchronous>, transform_indices = @transform_1, window_bounds = array<i64: 8, 16>}, {pipeline_mode = #tpu.pipeline_mode<synchronous>, transform_indices = @transform_2, window_bounds = array<i64: 8, 16>}, {pipeline_mode = #tpu.pipeline_mode<synchronous>, transform_indices = @transform_3, window_bounds = array<i64: 16, 8>}, {pipeline_mode = #tpu.pipeline_mode<synchronous>, transform_indices = @transform_4, window_bounds = array<i64: 16, 8>}, {transform_indices = @transform_5, window_bounds = array<i64: 1, 4, 8, 8>}]} {
    %c0 = arith.constant 0 : index
    %c0_0 = arith.constant 0 : index
    %c0_1 = arith.constant 0 : index
    %c0_2 = arith.constant 0 : index
    %0 = vector.load %arg2[%c0, %c0_0, %c0_1, %c0_2] : memref<1x3x16x16xf32, #tpu.memory_space<vmem>>, vector<1x1x16x16xf32>
    %1 = vector.shape_cast %0 : vector<1x1x16x16xf32> to vector<16x16xf32>
    %cst = arith.constant 5.700000e-02 : f32
    %2 = vector.broadcast %cst : f32 to vector<16x16xf32>
    %3 = arith.mulf %2, %1 : vector<16x16xf32>
    %c0_3 = arith.constant 0 : index
    %c1 = arith.constant 1 : index
    %c0_4 = arith.constant 0 : index
    %c0_5 = arith.constant 0 : index
    %4 = vector.load %arg2[%c0_3, %c1, %c0_4, %c0_5] : memref<1x3x16x16xf32, #tpu.memory_space<vmem>>, vector<1x1x16x16xf32>
    %5 = vector.shape_cast %4 : vector<1x1x16x16xf32> to vector<16x16xf32>
    %cst_6 = arith.constant 2.935000e-01 : f32
    %6 = vector.broadcast %cst_6 : f32 to vector<16x16xf32>
    %7 = arith.mulf %6, %5 : vector<16x16xf32>
    %8 = arith.addf %3, %7 : vector<16x16xf32>
    %c0_7 = arith.constant 0 : index
    %c2 = arith.constant 2 : index
    %c0_8 = arith.constant 0 : index
    %c0_9 = arith.constant 0 : index
    %9 = vector.load %arg2[%c0_7, %c2, %c0_8, %c0_9] : memref<1x3x16x16xf32, #tpu.memory_space<vmem>>, vector<1x1x16x16xf32>
    %10 = vector.shape_cast %9 : vector<1x1x16x16xf32> to vector<16x16xf32>
    %cst_10 = arith.constant 1.495000e-01 : f32
    %11 = vector.broadcast %cst_10 : f32 to vector<16x16xf32>
    %12 = arith.mulf %11, %10 : vector<16x16xf32>
    %13 = arith.addf %8, %12 : vector<16x16xf32>
    %14 = arith.truncf %13 : vector<16x16xf32> to vector<16x16xbf16>
    %c0_11 = arith.constant 0 : index
    %c0_12 = arith.constant 0 : index
    %15 = vector.load %arg3[%c0_11, %c0_12] : memref<8x16xbf16, #tpu.memory_space<vmem>>, vector<8x16xbf16>
    %cst_13 = arith.constant dense<0.000000e+00> : vector<8x16xf32>
    %16 = tpu.matmul %15, %14, %cst_13 {dimension_numbers = #tpu.dot_dimension_numbers<[1], [0], [0], [1], [0, 0, 1, 1], [], []>} : vector<8x16xbf16>, vector<16x16xbf16>, vector<8x16xf32> -> vector<8x16xf32>
    %c0_14 = arith.constant 0 : index
    %c0_15 = arith.constant 0 : index
    %17 = vector.load %arg4[%c0_14, %c0_15] : memref<8x16xbf16, #tpu.memory_space<vmem>>, vector<8x16xbf16>
    %cst_16 = arith.constant dense<0.000000e+00> : vector<8x16xf32>
    %18 = tpu.matmul %17, %14, %cst_16 {dimension_numbers = #tpu.dot_dimension_numbers<[1], [0], [0], [1], [0, 0, 1, 1], [], []>} : vector<8x16xbf16>, vector<16x16xbf16>, vector<8x16xf32> -> vector<8x16xf32>
    %19 = arith.truncf %16 : vector<8x16xf32> to vector<8x16xbf16>
    %20 = arith.truncf %18 : vector<8x16xf32> to vector<8x16xbf16>
    %c0_17 = arith.constant 0 : index
    %c0_18 = arith.constant 0 : index
    %21 = vector.load %arg5[%c0_17, %c0_18] : memref<16x8xbf16, #tpu.memory_space<vmem>>, vector<16x8xbf16>
    %cst_19 = arith.constant dense<0.000000e+00> : vector<8x8xf32>
    %22 = tpu.matmul %19, %21, %cst_19 {dimension_numbers = #tpu.dot_dimension_numbers<[1], [0], [0], [1], [0, 0, 1, 1], [], []>} : vector<8x16xbf16>, vector<16x8xbf16>, vector<8x8xf32> -> vector<8x8xf32>
    %c0_20 = arith.constant 0 : index
    %c0_21 = arith.constant 0 : index
    %c0_22 = arith.constant 0 : index
    %c0_23 = arith.constant 0 : index
    %23 = vector.load %arg7[%c0_20, %c0_21, %c0_22, %c0_23] : memref<1x4x8x8xf32, #tpu.memory_space<vmem>>, vector<1x1x8x8xf32>
    %24 = vector.shape_cast %23 : vector<1x1x8x8xf32> to vector<8x8xf32>
    %25 = vector.shape_cast %22 : vector<8x8xf32> to vector<1x1x8x8xf32>
    tpu.vector_store %arg7[%c0_20, %c0_21, %c0_22, %c0_23], %25 {strides = array<i32>} : memref<1x4x8x8xf32, #tpu.memory_space<vmem>>, vector<1x1x8x8xf32>,
    %c0_24 = arith.constant 0 : index
    %c0_25 = arith.constant 0 : index
    %26 = vector.load %arg5[%c0_24, %c0_25] : memref<16x8xbf16, #tpu.memory_space<vmem>>, vector<16x8xbf16>
    %cst_26 = arith.constant dense<0.000000e+00> : vector<8x8xf32>
    %27 = tpu.matmul %20, %26, %cst_26 {dimension_numbers = #tpu.dot_dimension_numbers<[1], [0], [0], [1], [0, 0, 1, 1], [], []>} : vector<8x16xbf16>, vector<16x8xbf16>, vector<8x8xf32> -> vector<8x8xf32>
    %c0_27 = arith.constant 0 : index
    %c1_28 = arith.constant 1 : index
    %c0_29 = arith.constant 0 : index
    %c0_30 = arith.constant 0 : index
    %28 = vector.load %arg7[%c0_27, %c1_28, %c0_29, %c0_30] : memref<1x4x8x8xf32, #tpu.memory_space<vmem>>, vector<1x1x8x8xf32>
    %29 = vector.shape_cast %28 : vector<1x1x8x8xf32> to vector<8x8xf32>
    %30 = vector.shape_cast %27 : vector<8x8xf32> to vector<1x1x8x8xf32>
    tpu.vector_store %arg7[%c0_27, %c1_28, %c0_29, %c0_30], %30 {strides = array<i32>} : memref<1x4x8x8xf32, #tpu.memory_space<vmem>>, vector<1x1x8x8xf32>,
    %c0_31 = arith.constant 0 : index
    %c0_32 = arith.constant 0 : index
    %31 = vector.load %arg6[%c0_31, %c0_32] : memref<16x8xbf16, #tpu.memory_space<vmem>>, vector<16x8xbf16>
    %cst_33 = arith.constant dense<0.000000e+00> : vector<8x8xf32>
    %32 = tpu.matmul %19, %31, %cst_33 {dimension_numbers = #tpu.dot_dimension_numbers<[1], [0], [0], [1], [0, 0, 1, 1], [], []>} : vector<8x16xbf16>, vector<16x8xbf16>, vector<8x8xf32> -> vector<8x8xf32>
    %c0_34 = arith.constant 0 : index
    %c2_35 = arith.constant 2 : index
    %c0_36 = arith.constant 0 : index
    %c0_37 = arith.constant 0 : index
    %33 = vector.load %arg7[%c0_34, %c2_35, %c0_36, %c0_37] : memref<1x4x8x8xf32, #tpu.memory_space<vmem>>, vector<1x1x8x8xf32>
    %34 = vector.shape_cast %33 : vector<1x1x8x8xf32> to vector<8x8xf32>
    %35 = vector.shape_cast %32 : vector<8x8xf32> to vector<1x1x8x8xf32>
    tpu.vector_store %arg7[%c0_34, %c2_35, %c0_36, %c0_37], %35 {strides = array<i32>} : memref<1x4x8x8xf32, #tpu.memory_space<vmem>>, vector<1x1x8x8xf32>,
    %c0_38 = arith.constant 0 : index
    %c0_39 = arith.constant 0 : index
    %36 = vector.load %arg6[%c0_38, %c0_39] : memref<16x8xbf16, #tpu.memory_space<vmem>>, vector<16x8xbf16>
    %cst_40 = arith.constant dense<0.000000e+00> : vector<8x8xf32>
    %37 = tpu.matmul %20, %36, %cst_40 {dimension_numbers = #tpu.dot_dimension_numbers<[1], [0], [0], [1], [0, 0, 1, 1], [], []>} : vector<8x16xbf16>, vector<16x8xbf16>, vector<8x8xf32> -> vector<8x8xf32>
    %c0_41 = arith.constant 0 : index
    %c3 = arith.constant 3 : index
    %c0_42 = arith.constant 0 : index
    %c0_43 = arith.constant 0 : index
    %38 = vector.load %arg7[%c0_41, %c3, %c0_42, %c0_43] : memref<1x4x8x8xf32, #tpu.memory_space<vmem>>, vector<1x1x8x8xf32>
    %39 = vector.shape_cast %38 : vector<1x1x8x8xf32> to vector<8x8xf32>
    %40 = vector.shape_cast %37 : vector<8x8xf32> to vector<1x1x8x8xf32>
    tpu.vector_store %arg7[%c0_41, %c3, %c0_42, %c0_43], %40 {strides = array<i32>} : memref<1x4x8x8xf32, #tpu.memory_space<vmem>>, vector<1x1x8x8xf32>,
    return
  }
  func.func @transform_0(%arg0: i32, %arg1: i32) -> (i32, i32, i32, i32) {
    %c0_i32 = arith.constant 0 : i32
    %c0_i32_0 = arith.constant 0 : i32
    %c0_i32_1 = arith.constant 0 : i32
    return %arg0, %c0_i32, %arg1, %c0_i32_0 : i32, i32, i32, i32
  }
  func.func @transform_1(%arg0: i32, %arg1: i32) -> (i32, i32) {
    %c0_i32 = arith.constant 0 : i32
    %c0_i32_0 = arith.constant 0 : i32
    %c0_i32_1 = arith.constant 0 : i32
    return %c0_i32, %c0_i32_0 : i32, i32
  }
  func.func @transform_2(%arg0: i32, %arg1: i32) -> (i32, i32) {
    %c0_i32 = arith.constant 0 : i32
    %c0_i32_0 = arith.constant 0 : i32
    %c0_i32_1 = arith.constant 0 : i32
    return %c0_i32, %c0_i32_0 : i32, i32
  }
  func.func @transform_3(%arg0: i32, %arg1: i32) -> (i32, i32) {
    %c0_i32 = arith.constant 0 : i32
    %c0_i32_0 = arith.constant 0 : i32
    %c0_i32_1 = arith.constant 0 : i32
    return %c0_i32, %c0_i32_0 : i32, i32
  }
  func.func @transform_4(%arg0: i32, %arg1: i32) -> (i32, i32) {
    %c0_i32 = arith.constant 0 : i32
    %c0_i32_0 = arith.constant 0 : i32
    %c0_i32_1 = arith.constant 0 : i32
    return %c0_i32, %c0_i32_0 : i32, i32
  }
  func.func @transform_5(%arg0: i32, %arg1: i32) -> (i32, i32, i32, i32) {
    %c0_i32 = arith.constant 0 : i32
    %c0_i32_0 = arith.constant 0 : i32
    %c0_i32_1 = arith.constant 0 : i32
    return %arg0, %c0_i32, %arg1, %c0_i32_0 : i32, i32, i32, i32
  }
}

</mosaic_0001>

<bundles_post_ra>
// kernel: tpu_custom_call.1
= control target key start
LH: loop header
LB: loop body
LE: loop exit
PB: predicated region body
PF: predicated region fallthrough
CT: control target
= control target key end

     0   :  { %10 = vsyncpa [#allocation3], 0  ;;  %s1162_s0 = inlined_call_operand.hbm [shape: f32[2,3,16,16], index: 0, kind: input, shape index: {}]   ;;  %s1163_s1 = inlined_call_operand.vmem [shape: bf16[8,16], index: 1, kind: input, shape index: {}]   ;;  %s1164_s2 = inlined_call_operand.vmem [shape: bf16[8,16], index: 2, kind: input, shape index: {}]   ;;  %s1165_s3 = inlined_call_operand.vmem [shape: bf16[16,8], index: 3, kind: input, shape index: {}]   ;;  %s1166_s4 = inlined_call_operand.vmem [shape: bf16[16,8], index: 4, kind: input, shape index: {}]   ;;  %s1167_s5 = inlined_call_operand.hbm [shape: f32[2,4,8,8], index: 5, kind: output, shape index: {}]  }
   0x1   :  { %12 = vsyncpa [#allocation3 + $0x1], 0 }
   0x2   :  { %13 = vsyncpa [#allocation4], 0 }
   0x3   :  { %15 = vsyncpa [#allocation4 + $0x1], 0  ;;  %s981_s18 = smov 0   ;;  %s983_s19 = smov 0  }
   0x4   :  { %s985_s20 = smov 0   ;;  %s987_s21 = smov 0  }
   0x5   :  { %s989_s22 = smov 0   ;;  %s991_s23 = smov 0  }
   0x6 LB: > { %s680_s24 = sadd.s32 4294967295, %s941_s23   ;;  %s681_s25 = sadd.s32 4294967294, %s941_s23   ;;  %s941_s23 = sphi %s991_s23, %s21_s23   ;;  %s937_s22 = sphi %s989_s22, %s1178_s22   ;;  %s933_s21 = sphi %s987_s21, %s1177_s21   ;;  %s929_s20 = sphi %s985_s20, %s1176_s20   ;;  %s925_s19 = sphi %s983_s19, %s1175_s19   ;;  %s921_s18 = sphi %s981_s18, %s1174_s18  }
   0x7   : > { %s33_s26 = sadd.s32 1, %s937_s22  ;;  %s42_s27 = sadd.s32 1, %s929_s20 }
   0x8   : > { %p35_p0 = scmp.ge.s32.totalorder %s33_s26, 2  ;;  %p49_p1 = scmp.ne.s32.totalorder %s929_s20, %s925_s19 }
   0x9   : > { %p50_p2 = scmp.eq.s32.totalorder %s941_s23, 0  ;;  %p55_p3 = scmp.ne.s32.totalorder %s925_s19, %s921_s18 }
   0xa   : > { %s1180_s26 = smov (%p35_p0, %s33_s26), 0  ;;  %p56_p5 = scmp.eq.s32.totalorder %s680_s24, 0 }
   0xb   : > { %p1022_p4 = por %p50_p2, %p49_p1  ;;  %s37_s29 = ssub.s32 %s937_s22, %s1180_s26 }
   0xc   : > { %p165_p6 = scmp.eq.s32.totalorder %s680_s24, 1  ;;  %p40_p7 = scmp.eq.s32.totalorder %s37_s29, 0 }
   0xd   : > { %p1028_p8 = por %p56_p5, %p55_p3  ;;  %p171_p10 = scmp.eq.s32.totalorder %s681_s25, 1 }
   0xe   : > { %p1032_p9 = por %p165_p6, %p49_p1  ;;  %p773_p13 = scmp.lt.s32.totalorder %s941_s23, 2 }
   0xf   : > { %s1037_s7 = scalar_select %p40_p7, %s929_s20, %s42_s27  }
  0x10   : > { %p1039_p11 = por %p171_p10, %p55_p3  ;;  %s203_s9 = sand.u32 1, %s929_s20  }
  0x11   : > { %s758_s10 = smul.u32 48, %s203_s9  ;;  %p1049_p0 = pnand %p773_p13, %p1022_p4 }
  0x12   : > { %s759_s11 = smul.u32 768, %s937_s22  ;;  %p685_p1 = scmp.ge.s32.totalorder %s941_s23, 1 }
  0x13   : > { %s207_s16 = scalar_lea.vmem [#allocation2], %s758_s10  ;;  %s204_s24 = scalar_lea.sflag [#allocation3], %s203_s9 }
  0x14   : > { %s215_s15 = scalar_lea.hbm %s1162_s0, %s759_s11  ;;  %s216_s17 = sshll.u32 %s207_s16, 4  ;;  %s217_s17 = int_to_ptr.vmem [resolvable:$true] %s216_s17 }
  0x15   : > { %p835_p2 = pneg %p1049_p0  ;;  %s846_s25 = scalar_lea.vmem %s217_s17, 768 }
  0x16   : > { %p847_p3 = scmp.ne.s32.totalorder %s217_s17, %s846_s25  ;;  %s943_s27 = smov [#allocation2]  }
  0x17   : > { %s851_s28 = sshll.u32 %s943_s27, 4  ;;  %s852_s28 = int_to_ptr.vmem [resolvable:$false] %s851_s28 }
  0x18   : > { %p849_p5 = pnand %p847_p3, %p835_p2  ;;  %s853_s29 = scalar_lea.vmem %s852_s28, 1536 }
  0x19   : > { %p854_p4 = scmp.lt.s32.totalorder %s217_s17, %s852_s28  ;;  %p855_p7 = scmp.lt.s32.totalorder %s853_s29, %s846_s25 }
  0x1a   : > { %p850_p6 = pneg %p849_p5 }
  0x1b   : > { %p856_p10 = por %p855_p7, %p854_p4 }
  0x1d   : > { %p857_p13 = pnand %p856_p10, %p850_p6 }
  0x1f   : > { %860 = shalt.err (!%p857_p13)
}
  0x20   : > { %s944_s10 = smov 128   ;;  %s945_s9 = smov 8  }
  0x21   : > { %768 = dma.hbm_to_vmem [thread:$0]  (!%p1049_p0), %s215_s15, 768, %s217_s17, %s204_s24, %s944_s10, %s944_s10, %s945_s9  }
  0x22   : > { %p224_p12 = scmp.lt.s32.totalorder %s941_s23, 3 }
  0x24   : > { %p225_p2 = pnand %p685_p1, %p224_p12 }
  0x25   : > { %s1065_s11 = sand.u32 (!%p225_p2), 1, %s925_s19  }
  0x26   : > { %228 = sbr.rel (%p225_p2) target bundleno = 469 (0x1d5), region = 40  ;;  %s231_s14 = scalar_lea.sflag (!%p225_p2), [#allocation3], %s1065_s11 }
  0x27   : > { %s760_s13 = smul.u32 (!%p225_p2), 48, %s1065_s11 }
  0x29   : > { %s234_s16 = scalar_lea.vmem (!%p225_p2), [#allocation2], %s760_s13 }
  0x2b   : > { %912 = dma.done.wait (%p1028_p8), %s231_s14, 768  }
  0x2c   : > { %914 = vsyncadd (%p1028_p8), %s231_s14, 4294966528  ;;  %v946_v0 = vmov 0.0   ;;  %vm947_vm0 = vmmov 0   ;;  %v263_v1 = vld [vmem:[%s234_s16] sm:$0xff]  ;;  %v264_v2 = vld [vmem:[%s234_s16 + $0x8] sm:$0xff]  ;;  %vm283_vm1 = vcmask 130048  }
  0x2d   : > { %722 = vmatprep.subr.bf16.mxu0 %v946_v0  ;;  %728 = vmatprep.subr.bf16.mxu1 %v946_v0  ;;  %v687_v3 = vld [vmem:[%s234_s16 + $0x10] sm:$0xff]  ;;  %v265_v4 = vmul.f32 0.057, %v263_v1  ;;  %v266_v5 = vmul.f32 0.057, %v264_v2  ;;  %v688_v6 = vld [vmem:[%s234_s16 + $0x18] sm:$0xff] }
  0x2e   : > { %724 = vmatprep.mubr.msk.bf16.mxu0 %vm947_vm0, %v946_v0  ;;  %730 = vmatprep.mubr.msk.bf16.mxu1 %vm947_vm0, %v946_v0  ;;  %v689_v7 = vld [vmem:[%s234_s16 + $0x20] sm:$0xff]  ;;  %v270_v8 = vmul.f32 0.2935, %v687_v3  ;;  %v271_v9 = vmul.f32 0.2935, %v688_v6  ;;  %v690_v10 = vld [vmem:[%s234_s16 + $0x28] sm:$0xff] }
  0x2f   : > { %v277_v11 = vmul.f32 0.1495, %v689_v7  ;;  %v278_v12 = vmul.f32 0.1495, %v690_v10  ;;  %v829_v18 = vld [vmem:[%s1165_s3] sm:$0xff]   ;;  %s686_s14 = sshll.u32 %s1065_s11, 5 }
  0x30   : > { %v272_v13 = vadd.f32 %v270_v8, %v265_v4  ;;  %v273_v14 = vadd.f32 %v271_v9, %v266_v5  ;;  %v282_v19 = vld [vmem:[%s1163_s1] sm:$0xf]  ;;  %vm424_vm2 = vcmask 64512   ;;  %s260_s16 = scalar_lea.vmem [#allocation5], %s686_s14  ;;  %s709_s12 = sshll.u32 %s933_s21, 9 }
  0x31   : > { %v327_v20 = vld [vmem:[%s1164_s2] sm:$0xf]  ;;  %s594_s30 = sshll.u32 %s260_s16, 4  ;;  %s1112_s24 = scalar_lea.hbm %s1167_s5, %s709_s12  ;;  %s1107_s30 = int_to_ptr.vmem [resolvable:$true] %s594_s30 }
  0x32   : > { %v279_v15 = vadd.f32 %v277_v11, %v272_v13  ;;  %v280_v16 = vadd.f32 %v278_v12, %v273_v14  ;;  %v830_v21 = vld [vmem:[%s1165_s3] sm:$0xff]   ;;  %s580_s21 = scalar_lea.sflag [#allocation4], %s1065_s11  ;;  %s861_s25 = scalar_lea.vmem %s1107_s30, 512 }
  0x33   : > { %v831_v24 = vld [vmem:[%s1166_s4] sm:$0xff]   ;;  %p862_p8 = scmp.ne.s32.totalorder %s1107_s30, %s861_s25  ;;  %s948_s27 = smov [#allocation5]  }
  0x34   : > { %v281_v17 = vpack.c.bf16 %v280_v16, %v279_v15  ;;  %v832_v25 = vld [vmem:[%s1166_s4] sm:$0xff]   ;;  %s865_s28 = sshll.u32 %s948_s27, 4  ;;  %s866_s28 = int_to_ptr.vmem [resolvable:$false] %s865_s28 }
  0x35   : > { %p863_p12 = pnand %p862_p8, %p1032_p9  ;;  %s867_s29 = scalar_lea.vmem %s866_s28, 1024 }
  0x36   : > { %723 = vmatpush3.bf16.msra.mxu0 %v281_v17  ;;  %729 = vmatpush3.bf16.msra.mxu1 %v281_v17  ;;  %p868_p1 = scmp.lt.s32.totalorder %s1107_s30, %s866_s28  ;;  %p869_p3 = scmp.lt.s32.totalorder %s867_s29, %s861_s25 }
  0x37   : > { %734 = vmatprep.subr.bf16.mxu0 %v946_v0  ;;  %740 = vmatprep.subr.bf16.mxu1 %v946_v0  ;;  %p864_p0 = pneg %p863_p12 }
  0x38   : > { %p870_p5 = por %p869_p3, %p868_p1 }
  0x39   : > { %725 = vmatmul.mubr.msk.bf16.vlgmr.msra.gmra.mxu0 %vm283_vm1, %v282_v19  ;;  %731 = vmatmul.mubr.msk.bf16.vlgmr.msra.gmra.mxu1 %vm283_vm1, %v327_v20 }
  0x3a   : > { %735 = vmatpush3.bf16.msra.mxu0 %v829_v18  ;;  %741 = vmatpush3.bf16.msra.mxu1 %v830_v21  ;;  %p871_p6 = pnand %p870_p5, %p864_p0 }
  0x3b   : > { %736 = vmatprep.mubr.msk.bf16.mxu0 %vm947_vm0, %v946_v0  ;;  %742 = vmatprep.mubr.msk.bf16.mxu1 %vm947_vm0, %v946_v0 }
  0x3c   : > { %746 = vmatprep.subr.bf16.mxu0 %v946_v0  ;;  %752 = vmatprep.subr.bf16.mxu1 %v946_v0 }
  0xf9   : > { %v321_v22 = vpop.f32.mrf.mxu0  ;;  %v365_v23 = vpop.f32.mrf.mxu1 }
  0xfa   : > { %v371_v26 = vpack.c.bf16 %v321_v22, %v321_v22  ;;  %v372_v27 = vpack.c.bf16 %v365_v23, %v365_v23 }
  0xfb   : > { %v726_v28 = vpop.f32.mrf.mxu0  ;;  %v732_v29 = vpop.f32.mrf.mxu1 }
  0xfc   : > { %737 = vmatmul.mubr.msk.bf16.vlgmr.msra.gmra.mxu0 %vm283_vm1, %v371_v26  ;;  %743 = vmatmul.mubr.msk.bf16.vlgmr.msra.gmra.mxu1 %vm283_vm1, %v372_v27 }
  0xfd   : > { %747 = vmatpush3.bf16.msra.mxu0 %v831_v24  ;;  %753 = vmatpush3.bf16.msra.mxu1 %v832_v25  ;;  %v324_v30 = vpop.f32.mrf.mxu0  ;;  %v368_v31 = vpop.f32.mrf.mxu1 }
  0xfe   : > { %748 = vmatprep.mubr.msk.bf16.mxu0 %vm947_vm0, %v946_v0  ;;  %754 = vmatprep.mubr.msk.bf16.mxu1 %vm947_vm0, %v946_v0 }
  0xff   : > { %v727_v32 = vpop.f32.mrf.mxu0  ;;  %v733_v33 = vpop.f32.mrf.mxu1 }
 0x104   : > { %749 = vmatmul.mubr.msk.bf16.vlgmr.msra.gmra.mxu0 %vm283_vm1, %v371_v26  ;;  %755 = vmatmul.mubr.msk.bf16.vlgmr.msra.gmra.mxu1 %vm283_vm1, %v372_v27 }
 0x1bc   : > { %v418_v34 = vpop.f32.mrf.mxu0  ;;  %v471_v35 = vpop.f32.mrf.mxu1 }
 0x1bd   : > { %425 = vst.msk [vmem:[%s260_s16] sm:$0xff] %vm424_vm2, %v418_v34  ;;  %697 = vst.msk [vmem:[%s260_s16 + $0x8] sm:$0xff] %vm424_vm2, %v471_v35 }
 0x1be   : > { %v738_v36 = vpop.f32.mrf.mxu0  ;;  %v744_v37 = vpop.f32.mrf.mxu1 }
 0x1c0   : > { %v421_v38 = vpop.f32.mrf.mxu0  ;;  %v474_v39 = vpop.f32.mrf.mxu1 }
 0x1c2   : > { %v739_v40 = vpop.f32.mrf.mxu0  ;;  %v745_v41 = vpop.f32.mrf.mxu1 }
 0x1c4   : > { %v521_v42 = vpop.f32.mrf.mxu0  ;;  %v571_v43 = vpop.f32.mrf.mxu1 }
 0x1c5   : > { %700 = vst.msk [vmem:[%s260_s16 + $0x10] sm:$0xff] %vm424_vm2, %v521_v42  ;;  %703 = vst.msk [vmem:[%s260_s16 + $0x18] sm:$0xff] %vm424_vm2, %v571_v43 }
 0x1c6   : > { %v750_v44 = vpop.f32.mrf.mxu0  ;;  %v756_v45 = vpop.f32.mrf.mxu1 }
 0x1c7   : > { %874 = shalt.err (!%p871_p6)
}
 0x1c8   : > { %s875_s10 = scalar_lea.hbm %s1112_s24, 512  ;;  %s879_s14 = scalar_lea.hbm %s1167_s5, 1024 }
 0x1c9   : > { %p876_p4 = scmp.ne.s32.totalorder %s1112_s24, %s875_s10  ;;  %p880_p13 = scmp.lt.s32.totalorder %s1112_s24, %s1167_s5 }
 0x1ca   : > { %p881_p2 = scmp.lt.s32.totalorder %s879_s14, %s875_s10 }
 0x1cb   : > { %p877_p7 = pnand %p876_p4, %p1032_p9 }
 0x1cc   : > { %p882_p8 = por %p881_p2, %p880_p13 }
 0x1cd   : > { %p878_p10 = pneg %p877_p7 }
 0x1cf   : > { %p883_p12 = pnand %p882_p8, %p878_p10 }
 0x1d1   : > { %886 = shalt.err (!%p883_p12)
}
 0x1d2   : > { %s949_s15 = smov 128   ;;  %s950_s17 = smov 8   ;;  %v524_v46 = vpop.f32.mrf.mxu0  ;;  %v574_v47 = vpop.f32.mrf.mxu1 }
 0x1d3   : > { %763 = dma.vmem_to_hbm [thread:$0]  (%p1032_p9), %s1107_s30, 512, %s1112_s24, %s580_s21, %s949_s15, %s949_s15, %s950_s17  }
 0x1d4   : > { %v751_v48 = vpop.f32.mrf.mxu0  ;;  %v757_v49 = vpop.f32.mrf.mxu1 }
 0x1d5 PF: > { %s609_s25 = sand.u32 1, %s921_s18   ;;  %p1173_p0 = scmp.ge.s32.totalorder %s941_s23, 2 }
 0x1d6   : > { %s610_s27 = scalar_lea.sflag [#allocation4], %s609_s25 }
 0x1d7   : > { %p770_p1 = pnand %p1173_p0, %p1039_p11 }
 0x1d9   : > { %p771_p3 = pneg %p770_p1 }
 0x1db   : > { %916 = dma.done.wait (%p771_p3), %s610_s27, 512  }
 0x1dc   : > { %918 = vsyncadd (%p771_p3), %s610_s27, 4294966784  ;;  %s21_s23 = sadd.s32 1, %s941_s23   ;;  %s1174_s18 = smov %s925_s19 }
 0x1dd   : > { %p18_p5 = scmp.ge.s32.totalorder %s21_s23, 4   ;;  %s1175_s19 = smov %s929_s20 }
 0x1de   : > { %s1176_s20 = smov %s1037_s7  ;;  %s1177_s21 = smov %s937_s22 }
 0x1df   : > { %s1178_s22 = smov %s1180_s26  ;;  %20 = sbr.rel (!%p18_p5) target bundleno = 6 (0x6), region = 90 }
 0x1e4   :  { %615 = vsyncpa [#allocation3], 1 }
 0x1e5   :  { %617 = vsyncpa [#allocation3 + $0x1], 1 }
 0x1e6   :  { %618 = vsyncpa [#allocation4], 1 }
 0x1e7   :  { %620 = vsyncpa [#allocation4 + $0x1], 1 }

</bundles_post_ra>
